<compile_context>
chip_gen: v5e
topology: v5e:2x2
jax: 0.10.0
libtpu: 0.0.40
codegen_flags: <defaults>
</compile_context>

<pallas_src>
import math

import jax
import jax.numpy as jnp
from jax.experimental import pallas as pl
from jax.experimental.pallas import tpu as pltpu


def _round_up(x, m):
    return ((x + m - 1) // m) * m


def _pad_len_for_tile(t, tile_rows):
    """Smallest multiple of 8 that is >= t and divides tile_rows (so samples of this
    padded length, packed from an aligned offset, never straddle a tile boundary)."""
    c = _round_up(t, 8)
    while tile_rows % c != 0:
        c += 8
    return c


def cls_head_kernel(x_ref,                        # (R, Cin_p) bf16
                    meta_ref,                     # (R, 1) int32: bit0 prev-ok, bit1 next-ok, bit2 valid
                    w0_ref, b0_ref, w1_ref, b1_ref, wc_ref, bc_ref,
                    o_ref):                       # (R, NC_p) f32
    meta = meta_ref[...]
    not_first = (meta & 1) != 0                   # prev tap allowed (t != 0 within sample)
    not_last = (meta & 2) != 0                    # next tap allowed (t != T_pad-1 within sample)
    valid = ((meta & 4) != 0).astype(jnp.float32)  # inside the valid prefix

    R = x_ref.shape[0]

    def conv_k3(h, w_ref, b_ref):
        # h: (R, Ci_p) f32.  Shifted taps via XLU roll; the where() zeroes the wrapped rows
        # AND the k=3 halo at sample boundaries, so taps never leak across samples/tiles.
        h_prev = jnp.where(not_first, pltpu.roll(h, 1, axis=0), 0.0)
        h_next = jnp.where(not_last, pltpu.roll(h, R - 1, axis=0), 0.0)
        # 3 bf16 MXU dots accumulated in f32 (no (R, 3*Ci) concat materialization).
        acc = jnp.dot(h_prev.astype(jnp.bfloat16), w_ref[0],
                      preferred_element_type=jnp.float32)
        acc = acc + jnp.dot(h.astype(jnp.bfloat16), w_ref[1],
                            preferred_element_type=jnp.float32)
        acc = acc + jnp.dot(h_next.astype(jnp.bfloat16), w_ref[2],
                            preferred_element_type=jnp.float32)
        return acc + b_ref[...]

    x = x_ref[...].astype(jnp.float32)
    h = jnp.maximum(conv_k3(x, w0_ref, b0_ref) * valid, 0.0)
    h = jnp.maximum(conv_k3(h, w1_ref, b1_ref) * valid, 0.0)
    logits = conv_k3(h, wc_ref, bc_ref) * valid
    o_ref[...] = logits.astype(o_ref.dtype)


def cls_head_forward(fpn_feats, fpn_lengths, params, *, tile_rows=None, target_rows=1024):
    """fpn_feats: list of (B, T_l, Cin) f32, channel-last.
    fpn_lengths: list of (B,) int32 valid prefix lengths (ActionFormer masks are prefix masks).
    Returns a tuple of per-level logits, each (B, T_l, num_classes) f32."""
    L = len(fpn_feats)
    B, _, Cin = fpn_feats[0].shape
    for f in fpn_feats:
        assert f.shape[0] == B and f.shape[2] == Cin
    Ts = [int(f.shape[1]) for f in fpn_feats]

    Fd = params["w1"].shape[2]
    NC = params["wc"].shape[2]
    Cin_p = _round_up(Cin, 128)
    Fd_p = _round_up(Fd, 128)
    NC_p = _round_up(NC, 128)

    # ---- row tile size: a multiple of the longest (8-padded) sample length -------------
    T_max_pad = _round_up(max(Ts), 8)
    if tile_rows is None:
        total_real = sum(B * _round_up(t, 8) for t in Ts)
        spt = max(1, min(target_rows, total_real) // T_max_pad)   # samples-per-tile
        tile_rows = T_max_pad * spt
    tile_rows = max(_round_up(int(tile_rows), 8), T_max_pad)

    # ---- ragged, sample-aligned packing of all (level, batch) samples ------------------
    act_dt = jnp.bfloat16
    x_pieces, meta_pieces, layout = [], [], []
    cur = 0
    for f, lens in zip(fpn_feats, fpn_lengths):
        T_l = f.shape[1]
        Tp = _pad_len_for_tile(T_l, tile_rows)
        start = _round_up(cur, Tp)                 # align level start to its sample length
        if start != cur:
            gap = start - cur
            x_pieces.append(jnp.zeros((gap, Cin_p), act_dt))
            meta_pieces.append(jnp.zeros((gap, 1), jnp.int32))
            cur = start
        xl = jnp.pad(f, ((0, 0), (0, Tp - T_l), (0, Cin_p - Cin))).astype(act_dt)
        x_pieces.append(xl.reshape(B * Tp, Cin_p))
        t_idx = jnp.arange(Tp, dtype=jnp.int32)
        nf = (t_idx != 0).astype(jnp.int32)
        nl = (t_idx != Tp - 1).astype(jnp.int32)
        vd = (t_idx[None, :] < lens.astype(jnp.int32)[:, None]).astype(jnp.int32)  # (B, Tp)
        meta_pieces.append((nf[None, :] + 2 * nl[None, :] + 4 * vd).reshape(B * Tp, 1))
        layout.append((cur, Tp))
        cur += B * Tp
    total = _round_up(cur, tile_rows)
    if total != cur:
        gap = total - cur
        x_pieces.append(jnp.zeros((gap, Cin_p), act_dt))
        meta_pieces.append(jnp.zeros((gap, 1), jnp.int32))
    x_packed = jnp.concatenate(x_pieces, axis=0)     # (total, Cin_p) bf16
    meta = jnp.concatenate(meta_pieces, axis=0)      # (total, 1) int32

    # ---- weights: (3, Ci, Co) padded to 128 lanes, bf16; biases stay f32 ----------------
    def pad_w(w, ci_p, co_p):
        k, ci, co = w.shape
        return jnp.pad(w, ((0, 0), (0, ci_p - ci), (0, co_p - co))).astype(act_dt)

    w0 = pad_w(params["w0"], Cin_p, Fd_p)
    w1 = pad_w(params["w1"], Fd_p, Fd_p)
    wc = pad_w(params["wc"], Fd_p, NC_p)
    b0 = jnp.pad(params["b0"], ((0, 0), (0, Fd_p - Fd)))
    b1 = jnp.pad(params["b1"], ((0, 0), (0, Fd_p - Fd)))
    bc = jnp.pad(params["bc"], ((0, 0), (0, NC_p - NC)))

    G = total // tile_rows

    # Scoped-VMEM hint: double-buffered x/meta/out tiles + resident bf16 weights + f32
    # intermediates, clamped to <=48 MiB so the tiling also fits v7x (64 MiB VMEM).
    w_vmem = 2 * (3 * (Cin_p * Fd_p + Fd_p * Fd_p + Fd_p * NC_p) * 2 + (2 * Fd_p + NC_p) * 4)
    row_vmem = (2 * Cin_p * 2) + (2 * 128 * 4) + (2 * NC_p * 4) \
               + (Cin_p + 3 * Fd_p + NC_p) * 4 * 2
    vmem_limit = int(min(max(w_vmem + tile_rows * row_vmem + (4 << 20), 32 << 20), 48 << 20))

    out = pl.pallas_call(
        cls_head_kernel,
        out_shape=jax.ShapeDtypeStruct((total, NC_p), jnp.float32),
        grid_spec=pltpu.PrefetchScalarGridSpec(
            num_scalar_prefetch=0,
            grid=(G,),
            in_specs=[
                pl.BlockSpec((tile_rows, Cin_p), lambda i: (i, 0)),     # x rows (tiled)
                pl.BlockSpec((tile_rows, 1), lambda i: (i, 0)),         # per-row flags
                pl.BlockSpec((3, Cin_p, Fd_p), lambda i: (0, 0, 0)),    # resident weights
                pl.BlockSpec((1, Fd_p), lambda i: (0, 0)),
                pl.BlockSpec((3, Fd_p, Fd_p), lambda i: (0, 0, 0)),
                pl.BlockSpec((1, Fd_p), lambda i: (0, 0)),
                pl.BlockSpec((3, Fd_p, NC_p), lambda i: (0, 0, 0)),
                pl.BlockSpec((1, NC_p), lambda i: (0, 0)),
            ],
            out_specs=pl.BlockSpec((tile_rows, NC_p), lambda i: (i, 0)),
        ),
        compiler_params=pltpu.CompilerParams(
            dimension_semantics=("parallel",),
            vmem_limit_bytes=vmem_limit,
        ),
    )(x_packed, meta, w0, b0, w1, b1, wc, bc)

    # ---- un-pack: drop lane padding, time padding and alignment gaps -------------------
    outs = []
    for (start, Tp), f in zip(layout, fpn_feats):
        T_l = f.shape[1]
        o = out[start:start + B * Tp, :NC].reshape(B, Tp, NC)[:, :T_l, :]
        outs.append(o)
    return tuple(outs)


# -------- pure-JAX (f32) reference of the same math, for a correctness check ------------
def _ref_conv_k3(x, w, b):
    xp = jnp.pad(x, ((0, 0), (1, 1), (0, 0)))
    return xp[:, :-2] @ w[0] + xp[:, 1:-1] @ w[1] + xp[:, 2:] @ w[2] + b


def ref_cls_head_level(x, mask_f, p):
    h = jnp.maximum(_ref_conv_k3(x, p["w0"], p["b0"]) * mask_f, 0.0)
    h = jnp.maximum(_ref_conv_k3(h, p["w1"], p["b1"]) * mask_f, 0.0)
    return _ref_conv_k3(h, p["wc"], p["bc"]) * mask_f


def init_params(key, input_dim, feat_dim, num_classes, prior_prob=0.01, empty_cls=()):
    k0, k1, k2 = jax.random.split(key, 3)
    # weights stored as (K=3, Cin, Cout) == transpose of PyTorch conv weight (Cout, Cin, K)
    w0 = 0.1 * jax.random.normal(k0, (3, input_dim, feat_dim), jnp.float32)
    w1 = 0.1 * jax.random.normal(k1, (3, feat_dim, feat_dim), jnp.float32)
    wc = 0.1 * jax.random.normal(k2, (3, feat_dim, num_classes), jnp.float32)
    # MaskedConv1D inits conv bias to 0; cls_head bias set from prior_prob (and empty_cls)
    b0 = jnp.zeros((1, feat_dim), jnp.float32)
    b1 = jnp.zeros((1, feat_dim), jnp.float32)
    bias_value = -math.log((1 - prior_prob) / prior_prob) if prior_prob > 0 else 0.0
    bc = jnp.full((1, num_classes), bias_value, jnp.float32)
    if len(empty_cls) > 0:
        empty_bias = -math.log((1 - 1e-6) / 1e-6)
        bc = bc.at[0, jnp.array(list(empty_cls))].set(empty_bias)
    return {"w0": w0, "b0": b0, "w1": w1, "b1": b1, "wc": wc, "bc": bc}


if __name__ == "__main__":
    key = jax.random.PRNGKey(0)
    kp, kx0, kx1 = jax.random.split(key, 3)

    B = 2
    input_dim = 32
    feat_dim = 32
    num_classes = 8
    params = init_params(kp, input_dim, feat_dim, num_classes)

    # Two FPN levels with different temporal lengths, channel-last layout (B, T, C).
    fpn_feats = [
        jax.random.normal(kx0, (B, 16, input_dim), jnp.float32),
        jax.random.normal(kx1, (B, 8, input_dim), jnp.float32),
    ]
    # ActionFormer masks are prefix (valid-length) masks -> pass lengths, mask is per-row flags.
    fpn_lengths = [jnp.array([16, 8], jnp.int32), jnp.array([8, 4], jnp.int32)]

    # small tile_rows here exercises the multi-tile grid path (3 tiles); production would
    # use the auto choice (~one longest sample, i.e. 1-2k rows, per grid step).
    out_logits = cls_head_forward(fpn_feats, fpn_lengths, params, tile_rows=16)
    out_logits = jax.block_until_ready(out_logits)

    # correctness check vs. a plain f32 reference; tolerance covers bf16 matmul inputs
    # (accumulation is f32 in both).
    for feat, lens, got in zip(fpn_feats, fpn_lengths, out_logits):
        T = feat.shape[1]
        mask_f = (jnp.arange(T)[None, :, None] < lens[:, None, None]).astype(jnp.float32)
        want = ref_cls_head_level(feat, mask_f, params)
        assert got.shape == want.shape
        err = float(jnp.max(jnp.abs(got - want)))
        assert jnp.allclose(got, want, rtol=5e-2, atol=5e-2), f"mismatch vs reference: {err}"

    print("KERNEL_OK")
</pallas_src>

<mosaic_0001>
module attributes {stable_mosaic.version = 11 : i64} {
  func.func @cls_head_kernel(%arg0: i32, %arg1: memref<16x128xbf16, #tpu.memory_space<vmem>>, %arg2: memref<16x1xi32, #tpu.memory_space<vmem>>, %arg3: memref<3x128x128xbf16, #tpu.memory_space<vmem>>, %arg4: memref<1x128xf32, #tpu.memory_space<vmem>>, %arg5: memref<3x128x128xbf16, #tpu.memory_space<vmem>>, %arg6: memref<1x128xf32, #tpu.memory_space<vmem>>, %arg7: memref<3x128x128xbf16, #tpu.memory_space<vmem>>, %arg8: memref<1x128xf32, #tpu.memory_space<vmem>>, %arg9: memref<16x128xf32, #tpu.memory_space<vmem>>) attributes {dimension_semantics = [#tpu.dimension_semantics<parallel>], iteration_bounds = array<i64: 3>, scalar_prefetch = 0 : i64, scratch_operands = 0 : i64, tpu.core_type = #tpu.core_type<tc>, window_params = [{transform_indices = @transform_0, window_bounds = array<i64: 16, 128>}, {transform_indices = @transform_1, window_bounds = array<i64: 16, 1>}, {pipeline_mode = #tpu.pipeline_mode<synchronous>, transform_indices = @transform_2, window_bounds = array<i64: 3, 128, 128>}, {pipeline_mode = #tpu.pipeline_mode<synchronous>, transform_indices = @transform_3, window_bounds = array<i64: 1, 128>}, {pipeline_mode = #tpu.pipeline_mode<synchronous>, transform_indices = @transform_4, window_bounds = array<i64: 3, 128, 128>}, {pipeline_mode = #tpu.pipeline_mode<synchronous>, transform_indices = @transform_5, window_bounds = array<i64: 1, 128>}, {pipeline_mode = #tpu.pipeline_mode<synchronous>, transform_indices = @transform_6, window_bounds = array<i64: 3, 128, 128>}, {pipeline_mode = #tpu.pipeline_mode<synchronous>, transform_indices = @transform_7, window_bounds = array<i64: 1, 128>}, {transform_indices = @transform_8, window_bounds = array<i64: 16, 128>}]} {
    %c0 = arith.constant 0 : index
    %c0_0 = arith.constant 0 : index
    %0 = vector.load %arg2[%c0, %c0_0] : memref<16x1xi32, #tpu.memory_space<vmem>>, vector<16x1xi32>
    %c1_i32 = arith.constant 1 : i32
    %1 = vector.broadcast %c1_i32 : i32 to vector<16x1xi32>
    %2 = arith.andi %0, %1 : vector<16x1xi32>
    %c0_i32 = arith.constant 0 : i32
    %3 = vector.broadcast %c0_i32 : i32 to vector<16x1xi32>
    %4 = arith.cmpi ne, %2, %3 : vector<16x1xi32>
    %c2_i32 = arith.constant 2 : i32
    %5 = vector.broadcast %c2_i32 : i32 to vector<16x1xi32>
    %6 = arith.andi %0, %5 : vector<16x1xi32>
    %c0_i32_1 = arith.constant 0 : i32
    %7 = vector.broadcast %c0_i32_1 : i32 to vector<16x1xi32>
    %8 = arith.cmpi ne, %6, %7 : vector<16x1xi32>
    %c4_i32 = arith.constant 4 : i32
    %9 = vector.broadcast %c4_i32 : i32 to vector<16x1xi32>
    %10 = arith.andi %0, %9 : vector<16x1xi32>
    %c0_i32_2 = arith.constant 0 : i32
    %11 = vector.broadcast %c0_i32_2 : i32 to vector<16x1xi32>
    %12 = arith.cmpi ne, %10, %11 : vector<16x1xi32>
    %13 = arith.extui %12 : vector<16x1xi1> to vector<16x1xi32>
    %14 = arith.sitofp %13 : vector<16x1xi32> to vector<16x1xf32>
    %c0_3 = arith.constant 0 : index
    %c0_4 = arith.constant 0 : index
    %15 = vector.load %arg1[%c0_3, %c0_4] : memref<16x128xbf16, #tpu.memory_space<vmem>>, vector<16x128xbf16>
    %16 = arith.extf %15 : vector<16x128xbf16> to vector<16x128xf32>
    %c1_i32_5 = arith.constant 1 : i32
    %17 = tpu.dynamic_rotate %16 by %c1_i32_5 dim 0 : vector<16x128xf32>, i32 -> vector<16x128xf32>
    %cst = arith.constant 0.000000e+00 : f32
    %18 = vector.shape_cast %4 : vector<16x1xi1> to vector<16x1xi1>
    %19 = vector.broadcast %18 : vector<16x1xi1> to vector<16x128xi1>
    %20 = vector.broadcast %cst : f32 to vector<16x128xf32>
    %21 = arith.select %19, %17, %20 : vector<16x128xi1>, vector<16x128xf32>
    %c15_i32 = arith.constant 15 : i32
    %22 = tpu.dynamic_rotate %16 by %c15_i32 dim 0 : vector<16x128xf32>, i32 -> vector<16x128xf32>
    %cst_6 = arith.constant 0.000000e+00 : f32
    %23 = vector.shape_cast %8 : vector<16x1xi1> to vector<16x1xi1>
    %24 = vector.broadcast %23 : vector<16x1xi1> to vector<16x128xi1>
    %25 = vector.broadcast %cst_6 : f32 to vector<16x128xf32>
    %26 = arith.select %24, %22, %25 : vector<16x128xi1>, vector<16x128xf32>
    %27 = arith.truncf %21 : vector<16x128xf32> to vector<16x128xbf16>
    %c0_7 = arith.constant 0 : index
    %c0_8 = arith.constant 0 : index
    %c0_9 = arith.constant 0 : index
    %28 = vector.load %arg3[%c0_7, %c0_8, %c0_9] : memref<3x128x128xbf16, #tpu.memory_space<vmem>>, vector<1x128x128xbf16>
    %29 = vector.shape_cast %28 : vector<1x128x128xbf16> to vector<128x128xbf16>
    %cst_10 = arith.constant dense<0.000000e+00> : vector<16x128xf32>
    %30 = tpu.matmul %27, %29, %cst_10 {dimension_numbers = #tpu.dot_dimension_numbers<[1], [0], [0], [1], [0, 0, 1, 1], [], []>} : vector<16x128xbf16>, vector<128x128xbf16>, vector<16x128xf32> -> vector<16x128xf32>
    %31 = arith.truncf %16 : vector<16x128xf32> to vector<16x128xbf16>
    %c1 = arith.constant 1 : index
    %c0_11 = arith.constant 0 : index
    %c0_12 = arith.constant 0 : index
    %32 = vector.load %arg3[%c1, %c0_11, %c0_12] : memref<3x128x128xbf16, #tpu.memory_space<vmem>>, vector<1x128x128xbf16>
    %33 = vector.shape_cast %32 : vector<1x128x128xbf16> to vector<128x128xbf16>
    %cst_13 = arith.constant dense<0.000000e+00> : vector<16x128xf32>
    %34 = tpu.matmul %31, %33, %cst_13 {dimension_numbers = #tpu.dot_dimension_numbers<[1], [0], [0], [1], [0, 0, 1, 1], [], []>} : vector<16x128xbf16>, vector<128x128xbf16>, vector<16x128xf32> -> vector<16x128xf32>
    %35 = arith.addf %30, %34 : vector<16x128xf32>
    %36 = arith.truncf %26 : vector<16x128xf32> to vector<16x128xbf16>
    %c2 = arith.constant 2 : index
    %c0_14 = arith.constant 0 : index
    %c0_15 = arith.constant 0 : index
    %37 = vector.load %arg3[%c2, %c0_14, %c0_15] : memref<3x128x128xbf16, #tpu.memory_space<vmem>>, vector<1x128x128xbf16>
    %38 = vector.shape_cast %37 : vector<1x128x128xbf16> to vector<128x128xbf16>
    %cst_16 = arith.constant dense<0.000000e+00> : vector<16x128xf32>
    %39 = tpu.matmul %36, %38, %cst_16 {dimension_numbers = #tpu.dot_dimension_numbers<[1], [0], [0], [1], [0, 0, 1, 1], [], []>} : vector<16x128xbf16>, vector<128x128xbf16>, vector<16x128xf32> -> vector<16x128xf32>
    %40 = arith.addf %35, %39 : vector<16x128xf32>
    %c0_17 = arith.constant 0 : index
    %c0_18 = arith.constant 0 : index
    %41 = vector.load %arg4[%c0_17, %c0_18] : memref<1x128xf32, #tpu.memory_space<vmem>>, vector<1x128xf32>
    %42 = vector.broadcast %41 : vector<1x128xf32> to vector<16x128xf32>
    %43 = arith.addf %40, %42 : vector<16x128xf32>
    %44 = vector.broadcast %14 : vector<16x1xf32> to vector<16x128xf32>
    %45 = arith.mulf %43, %44 : vector<16x128xf32>
    %cst_19 = arith.constant 0.000000e+00 : f32
    %46 = vector.broadcast %cst_19 : f32 to vector<16x128xf32>
    %47 = arith.maximumf %45, %46 : vector<16x128xf32>
    %c1_i32_20 = arith.constant 1 : i32
    %48 = tpu.dynamic_rotate %47 by %c1_i32_20 dim 0 : vector<16x128xf32>, i32 -> vector<16x128xf32>
    %cst_21 = arith.constant 0.000000e+00 : f32
    %49 = vector.shape_cast %4 : vector<16x1xi1> to vector<16x1xi1>
    %50 = vector.broadcast %49 : vector<16x1xi1> to vector<16x128xi1>
    %51 = vector.broadcast %cst_21 : f32 to vector<16x128xf32>
    %52 = arith.select %50, %48, %51 : vector<16x128xi1>, vector<16x128xf32>
    %c15_i32_22 = arith.constant 15 : i32
    %53 = tpu.dynamic_rotate %47 by %c15_i32_22 dim 0 : vector<16x128xf32>, i32 -> vector<16x128xf32>
    %cst_23 = arith.constant 0.000000e+00 : f32
    %54 = vector.shape_cast %8 : vector<16x1xi1> to vector<16x1xi1>
    %55 = vector.broadcast %54 : vector<16x1xi1> to vector<16x128xi1>
    %56 = vector.broadcast %cst_23 : f32 to vector<16x128xf32>
    %57 = arith.select %55, %53, %56 : vector<16x128xi1>, vector<16x128xf32>
    %58 = arith.truncf %52 : vector<16x128xf32> to vector<16x128xbf16>
    %c0_24 = arith.constant 0 : index
    %c0_25 = arith.constant 0 : index
    %c0_26 = arith.constant 0 : index
    %59 = vector.load %arg5[%c0_24, %c0_25, %c0_26] : memref<3x128x128xbf16, #tpu.memory_space<vmem>>, vector<1x128x128xbf16>
    %60 = vector.shape_cast %59 : vector<1x128x128xbf16> to vector<128x128xbf16>
    %cst_27 = arith.constant dense<0.000000e+00> : vector<16x128xf32>
    %61 = tpu.matmul %58, %60, %cst_27 {dimension_numbers = #tpu.dot_dimension_numbers<[1], [0], [0], [1], [0, 0, 1, 1], [], []>} : vector<16x128xbf16>, vector<128x128xbf16>, vector<16x128xf32> -> vector<16x128xf32>
    %62 = arith.truncf %47 : vector<16x128xf32> to vector<16x128xbf16>
    %c1_28 = arith.constant 1 : index
    %c0_29 = arith.constant 0 : index
    %c0_30 = arith.constant 0 : index
    %63 = vector.load %arg5[%c1_28, %c0_29, %c0_30] : memref<3x128x128xbf16, #tpu.memory_space<vmem>>, vector<1x128x128xbf16>
    %64 = vector.shape_cast %63 : vector<1x128x128xbf16> to vector<128x128xbf16>
    %cst_31 = arith.constant dense<0.000000e+00> : vector<16x128xf32>
    %65 = tpu.matmul %62, %64, %cst_31 {dimension_numbers = #tpu.dot_dimension_numbers<[1], [0], [0], [1], [0, 0, 1, 1], [], []>} : vector<16x128xbf16>, vector<128x128xbf16>, vector<16x128xf32> -> vector<16x128xf32>
    %66 = arith.addf %61, %65 : vector<16x128xf32>
    %67 = arith.truncf %57 : vector<16x128xf32> to vector<16x128xbf16>
    %c2_32 = arith.constant 2 : index
    %c0_33 = arith.constant 0 : index
    %c0_34 = arith.constant 0 : index
    %68 = vector.load %arg5[%c2_32, %c0_33, %c0_34] : memref<3x128x128xbf16, #tpu.memory_space<vmem>>, vector<1x128x128xbf16>
    %69 = vector.shape_cast %68 : vector<1x128x128xbf16> to vector<128x128xbf16>
    %cst_35 = arith.constant dense<0.000000e+00> : vector<16x128xf32>
    %70 = tpu.matmul %67, %69, %cst_35 {dimension_numbers = #tpu.dot_dimension_numbers<[1], [0], [0], [1], [0, 0, 1, 1], [], []>} : vector<16x128xbf16>, vector<128x128xbf16>, vector<16x128xf32> -> vector<16x128xf32>
    %71 = arith.addf %66, %70 : vector<16x128xf32>
    %c0_36 = arith.constant 0 : index
    %c0_37 = arith.constant 0 : index
    %72 = vector.load %arg6[%c0_36, %c0_37] : memref<1x128xf32, #tpu.memory_space<vmem>>, vector<1x128xf32>
    %73 = vector.broadcast %72 : vector<1x128xf32> to vector<16x128xf32>
    %74 = arith.addf %71, %73 : vector<16x128xf32>
    %75 = vector.broadcast %14 : vector<16x1xf32> to vector<16x128xf32>
    %76 = arith.mulf %74, %75 : vector<16x128xf32>
    %cst_38 = arith.constant 0.000000e+00 : f32
    %77 = vector.broadcast %cst_38 : f32 to vector<16x128xf32>
    %78 = arith.maximumf %76, %77 : vector<16x128xf32>
    %c1_i32_39 = arith.constant 1 : i32
    %79 = tpu.dynamic_rotate %78 by %c1_i32_39 dim 0 : vector<16x128xf32>, i32 -> vector<16x128xf32>
    %cst_40 = arith.constant 0.000000e+00 : f32
    %80 = vector.shape_cast %4 : vector<16x1xi1> to vector<16x1xi1>
    %81 = vector.broadcast %80 : vector<16x1xi1> to vector<16x128xi1>
    %82 = vector.broadcast %cst_40 : f32 to vector<16x128xf32>
    %83 = arith.select %81, %79, %82 : vector<16x128xi1>, vector<16x128xf32>
    %c15_i32_41 = arith.constant 15 : i32
    %84 = tpu.dynamic_rotate %78 by %c15_i32_41 dim 0 : vector<16x128xf32>, i32 -> vector<16x128xf32>
    %cst_42 = arith.constant 0.000000e+00 : f32
    %85 = vector.shape_cast %8 : vector<16x1xi1> to vector<16x1xi1>
    %86 = vector.broadcast %85 : vector<16x1xi1> to vector<16x128xi1>
    %87 = vector.broadcast %cst_42 : f32 to vector<16x128xf32>
    %88 = arith.select %86, %84, %87 : vector<16x128xi1>, vector<16x128xf32>
    %89 = arith.truncf %83 : vector<16x128xf32> to vector<16x128xbf16>
    %c0_43 = arith.constant 0 : index
    %c0_44 = arith.constant 0 : index
    %c0_45 = arith.constant 0 : index
    %90 = vector.load %arg7[%c0_43, %c0_44, %c0_45] : memref<3x128x128xbf16, #tpu.memory_space<vmem>>, vector<1x128x128xbf16>
    %91 = vector.shape_cast %90 : vector<1x128x128xbf16> to vector<128x128xbf16>
    %cst_46 = arith.constant dense<0.000000e+00> : vector<16x128xf32>
    %92 = tpu.matmul %89, %91, %cst_46 {dimension_numbers = #tpu.dot_dimension_numbers<[1], [0], [0], [1], [0, 0, 1, 1], [], []>} : vector<16x128xbf16>, vector<128x128xbf16>, vector<16x128xf32> -> vector<16x128xf32>
    %93 = arith.truncf %78 : vector<16x128xf32> to vector<16x128xbf16>
    %c1_47 = arith.constant 1 : index
    %c0_48 = arith.constant 0 : index
    %c0_49 = arith.constant 0 : index
    %94 = vector.load %arg7[%c1_47, %c0_48, %c0_49] : memref<3x128x128xbf16, #tpu.memory_space<vmem>>, vector<1x128x128xbf16>
    %95 = vector.shape_cast %94 : vector<1x128x128xbf16> to vector<128x128xbf16>
    %cst_50 = arith.constant dense<0.000000e+00> : vector<16x128xf32>
    %96 = tpu.matmul %93, %95, %cst_50 {dimension_numbers = #tpu.dot_dimension_numbers<[1], [0], [0], [1], [0, 0, 1, 1], [], []>} : vector<16x128xbf16>, vector<128x128xbf16>, vector<16x128xf32> -> vector<16x128xf32>
    %97 = arith.addf %92, %96 : vector<16x128xf32>
    %98 = arith.truncf %88 : vector<16x128xf32> to vector<16x128xbf16>
    %c2_51 = arith.constant 2 : index
    %c0_52 = arith.constant 0 : index
    %c0_53 = arith.constant 0 : index
    %99 = vector.load %arg7[%c2_51, %c0_52, %c0_53] : memref<3x128x128xbf16, #tpu.memory_space<vmem>>, vector<1x128x128xbf16>
    %100 = vector.shape_cast %99 : vector<1x128x128xbf16> to vector<128x128xbf16>
    %cst_54 = arith.constant dense<0.000000e+00> : vector<16x128xf32>
    %101 = tpu.matmul %98, %100, %cst_54 {dimension_numbers = #tpu.dot_dimension_numbers<[1], [0], [0], [1], [0, 0, 1, 1], [], []>} : vector<16x128xbf16>, vector<128x128xbf16>, vector<16x128xf32> -> vector<16x128xf32>
    %102 = arith.addf %97, %101 : vector<16x128xf32>
    %c0_55 = arith.constant 0 : index
    %c0_56 = arith.constant 0 : index
    %103 = vector.load %arg8[%c0_55, %c0_56] : memref<1x128xf32, #tpu.memory_space<vmem>>, vector<1x128xf32>
    %104 = vector.broadcast %103 : vector<1x128xf32> to vector<16x128xf32>
    %105 = arith.addf %102, %104 : vector<16x128xf32>
    %106 = vector.broadcast %14 : vector<16x1xf32> to vector<16x128xf32>
    %107 = arith.mulf %105, %106 : vector<16x128xf32>
    %c0_57 = arith.constant 0 : index
    %c0_58 = arith.constant 0 : index
    %108 = vector.load %arg9[%c0_57, %c0_58] : memref<16x128xf32, #tpu.memory_space<vmem>>, vector<16x128xf32>
    tpu.vector_store %arg9[%c0_57, %c0_58], %107 {strides = array<i32>} : memref<16x128xf32, #tpu.memory_space<vmem>>, vector<16x128xf32>,
    return
  }
  func.func @transform_0(%arg0: i32) -> (i32, i32) {
    %c0_i32 = arith.constant 0 : i32
    %c0_i32_0 = arith.constant 0 : i32
    return %arg0, %c0_i32 : i32, i32
  }
  func.func @transform_1(%arg0: i32) -> (i32, i32) {
    %c0_i32 = arith.constant 0 : i32
    %c0_i32_0 = arith.constant 0 : i32
    return %arg0, %c0_i32 : i32, i32
  }
  func.func @transform_2(%arg0: i32) -> (i32, i32, i32) {
    %c0_i32 = arith.constant 0 : i32
    %c0_i32_0 = arith.constant 0 : i32
    %c0_i32_1 = arith.constant 0 : i32
    %c0_i32_2 = arith.constant 0 : i32
    return %c0_i32, %c0_i32_0, %c0_i32_1 : i32, i32, i32
  }
  func.func @transform_3(%arg0: i32) -> (i32, i32) {
    %c0_i32 = arith.constant 0 : i32
    %c0_i32_0 = arith.constant 0 : i32
    %c0_i32_1 = arith.constant 0 : i32
    return %c0_i32, %c0_i32_0 : i32, i32
  }
  func.func @transform_4(%arg0: i32) -> (i32, i32, i32) {
    %c0_i32 = arith.constant 0 : i32
    %c0_i32_0 = arith.constant 0 : i32
    %c0_i32_1 = arith.constant 0 : i32
    %c0_i32_2 = arith.constant 0 : i32
    return %c0_i32, %c0_i32_0, %c0_i32_1 : i32, i32, i32
  }
  func.func @transform_5(%arg0: i32) -> (i32, i32) {
    %c0_i32 = arith.constant 0 : i32
    %c0_i32_0 = arith.constant 0 : i32
    %c0_i32_1 = arith.constant 0 : i32
    return %c0_i32, %c0_i32_0 : i32, i32
  }
  func.func @transform_6(%arg0: i32) -> (i32, i32, i32) {
    %c0_i32 = arith.constant 0 : i32
    %c0_i32_0 = arith.constant 0 : i32
    %c0_i32_1 = arith.constant 0 : i32
    %c0_i32_2 = arith.constant 0 : i32
    return %c0_i32, %c0_i32_0, %c0_i32_1 : i32, i32, i32
  }
  func.func @transform_7(%arg0: i32) -> (i32, i32) {
    %c0_i32 = arith.constant 0 : i32
    %c0_i32_0 = arith.constant 0 : i32
    %c0_i32_1 = arith.constant 0 : i32
    return %c0_i32, %c0_i32_0 : i32, i32
  }
  func.func @transform_8(%arg0: i32) -> (i32, i32) {
    %c0_i32 = arith.constant 0 : i32
    %c0_i32_0 = arith.constant 0 : i32
    return %arg0, %c0_i32 : i32, i32
  }
}

</mosaic_0001>

<bundles_post_ra>
// kernel: tpu_custom_call.1
= control target key start
LH: loop header
LB: loop body
LE: loop exit
PB: predicated region body
PF: predicated region fallthrough
CT: control target
= control target key end

     0   :  { %s2265_s0 = inlined_call_operand.vmem [shape: bf16[48,128], index: 0, kind: input, shape index: {}]   ;;  %s2266_s1 = inlined_call_operand.vmem [shape: s32[48,1], index: 1, kind: input, shape index: {}]   ;;  %s2267_s2 = inlined_call_operand.hbm [shape: bf16[3,128,128], index: 2, kind: input, shape index: {}]   ;;  %s2268_s3 = inlined_call_operand.vmem [shape: f32[1,128], index: 3, kind: input, shape index: {}]   ;;  %s2269_s4 = inlined_call_operand.hbm [shape: bf16[3,128,128], index: 4, kind: input, shape index: {}]   ;;  %s2270_s5 = inlined_call_operand.vmem [shape: f32[1,128], index: 5, kind: input, shape index: {}]   ;;  %s2271_s6 = inlined_call_operand.hbm [shape: bf16[3,128,128], index: 6, kind: input, shape index: {}]   ;;  %s2272_s7 = inlined_call_operand.vmem [shape: f32[1,128], index: 7, kind: input, shape index: {}]   ;;  %s2273_s8 = inlined_call_operand.hbm [shape: f32[48,128], index: 8, kind: output, shape index: {}]  }
   0x1   :  { %2274 = sst [smem:[#allocation12_spill]] %s2267_s2 }
   0x2   :  { %2275 = sst [smem:[#allocation13_spill]] %s2269_s4 }
   0x3   :  { %13 = vsyncpa [#allocation3], 0 }
   0x4   :  { %14 = vsyncpa [#allocation6], 0 }
   0x5   :  { %15 = vsyncpa [#allocation4], 0 }
   0x6   :  { %17 = vsyncpa [#allocation4 + $0x1], 0  ;;  %s2059_s27 = smov 0   ;;  %s2061_s28 = smov 0  }
   0x7   :  { %s2063_s29 = smov 0   ;;  %s2065_s30 = smov 0  }
   0x8 LB: > { %s2080_s9 = sadd.s32 4294967295, %s2003_s30   ;;  %s1350_s10 = sadd.s32 4294967294, %s2003_s30   ;;  %s2003_s30 = sphi %s2065_s30, %s2289_s30   ;;  %s1999_s29 = sphi %s2063_s29, %s2288_s29   ;;  %s1995_s28 = sphi %s2061_s28, %s2287_s28   ;;  %s1991_s27 = sphi %s2059_s27, %s2286_s27  }
   0x9   : > { %s2084_s11 = sadd.s32 1, %s2003_s30   ;;  %s208_s12 = sadd.s32 1, %s1999_s29 }
   0xa   : > { %s205_s13 = ssub.s32 %s2003_s30, %s2084_s11  ;;  %p218_p0 = scmp.ne.s32.totalorder %s1999_s29, %s1995_s28 }
   0xb   : > { %p206_p1 = scmp.eq.s32.totalorder %s205_s13, 0  ;;  %p219_p2 = scmp.eq.s32.totalorder %s2080_s9, 2 }
   0xc   : > { %p224_p3 = scmp.ne.s32.totalorder %s1995_s28, %s1991_s27  ;;  %p225_p4 = scmp.eq.s32.totalorder %s1350_s10, 2 }
   0xd   : > { %s2095_s14 = scalar_select %p206_p1, %s1999_s29, %s208_s12  }
   0xe   : > { %p2097_p5 = por %p219_p2, %p218_p0  ;;  %p2101_p6 = por %p225_p4, %p224_p3 }
   0xf   : > { %p1351_p7 = scmp.ge.s32.totalorder %s2003_s30, 1  ;;  %p232_p8 = scmp.lt.s32.totalorder %s2003_s30, 4 }
  0x10   : > { %p1784_p9 = scmp.eq.s32.totalorder %s2080_s9, 0  ;;  %s2279_s4 = sld [smem:[#allocation13_spill]] }
  0x11   : > { %p2108_p10 = pnand %p1351_p7, %p232_p8  ;;  %s2280_s2 = sld [smem:[#allocation12_spill]] }
  0x12   : > { %s2005_s25 = smov [#allocation5]   ;;  %s2006_s10 = smov 64  }
  0x13   : > { %p1770_p11 = pneg %p2108_p10  ;;  %s262_s26 = sshll.u32 %s2005_s25, 4  ;;  %s263_s26 = int_to_ptr.vmem [resolvable:$true] %s262_s26 }
  0x14   : > { %s2007_s12 = smov 4   ;;  %s2008_s13 = smov [#allocation2]  }
  0x15   : > { %p2122_p12 = pnand %p1784_p9, %p1770_p11  ;;  %s245_s18 = sshll.u32 %s2008_s13, 4  ;;  %s246_s18 = int_to_ptr.vmem [resolvable:$true] %s245_s18 }
  0x16   : > { %s260_s20 = sshll.u32 %s2279_s4, 4  ;;  %s277_s22 = sshll.u32 %s2271_s6, 4  ;;  %s261_s20 = int_to_ptr.hbm [resolvable:$true] %s260_s20  ;;  %s278_s22 = int_to_ptr.hbm [resolvable:$true] %s277_s22 }
  0x17   : > { %s243_s23 = sshll.u32 %s2280_s2, 4  ;;  %s2009_s2 = smov [#allocation7]   ;;  %s244_s23 = int_to_ptr.hbm [resolvable:$true] %s243_s23 }
  0x18   : > { %1776 = dma.hbm_to_vmem [thread:$0]  (!%p2122_p12), %s261_s20, 3072, %s263_s26, [#allocation6], %s2006_s10, %s2006_s10, %s2007_s12  }
  0x19   : > { %1773 = dma.hbm_to_vmem [thread:$0]  (!%p2122_p12), %s244_s23, 3072, %s246_s18, [#allocation3], %s2006_s10, %s2006_s10, %s2007_s12  }
  0x1a   : > { %s279_s4 = sshll.u32 %s2009_s2, 4  ;;  %316 = sbr.rel (%p2108_p10) target bundleno = 627 (0x273), region = 52  ;;  %s280_s4 = int_to_ptr.vmem [resolvable:$true] %s279_s4 }
  0x1b   : > { %1779 = dma.hbm_to_vmem [thread:$0]  (!%p2122_p12), %s278_s22, 3072, %s280_s4, [#allocation6], %s2006_s10, %s2006_s10, %s2007_s12  }
  0x1f   : > { %1978 = dma.done.wait (%p1784_p9), [#allocation3], 3072  }
  0x20   : > { %1980 = vsyncadd (%p1784_p9), [#allocation3], 4294964224 }
  0x21   : > { %1982 = dma.done.wait (%p1784_p9), [#allocation6], 6144  }
  0x22   : > { %1984 = vsyncadd (%p1784_p9), [#allocation6], 4294961152  ;;  %s1361_s2 = sshll.u32 %s2080_s9, 1  ;;  %v2010_v0 = vmov 0   ;;  %v1698_v3 = vld [vmem:[#allocation2 + $0x78] sm:$0xff]  ;;  %v1697_v7 = vld [vmem:[#allocation2 + $0x70] sm:$0xff]  ;;  %v403_v44 = vlaneseq }
  0x23   : > { %1833 = vset.pattern.permute.xlu1 %v2010_v0  ;;  %1832 = vset.pattern.permute.xlu0 %v2010_v0  ;;  %p367_p13 = scmp.lt.s32.totalorder %s1361_s2, 5  ;;  %v1690_v6 = vld [vmem:[#allocation2 + $0x38] sm:$0xff]  ;;  %v1689_v11 = vld [vmem:[#allocation2 + $0x30] sm:$0xff]  ;;  %v1696_v15 = vld [vmem:[#allocation2 + $0x68] sm:$0xff]  ;;  %v2011_v39 = vmov 0.0   ;;  %s363_s21 = sand.u32 1, %s1995_s28  }
  0x24   : > { %1834 = vset.pattern.permute.xlu2 %v2010_v0  ;;  %525 = vmatpush.bf16.msra.mxu0 %v1698_v3  ;;  %v1706_v8 = vld [vmem:[#allocation2 + $0xb8] sm:$0xff]  ;;  %v1705_v14 = vld [vmem:[#allocation2 + $0xb0] sm:$0xff]  ;;  %v1688_v16 = vld [vmem:[#allocation2 + $0x28] sm:$0xff]  ;;  %v2166_v47 = vshrl.u32 %v403_v44, 7  ;;  %s1755_s17 = sshll.u32 %s2080_s9, 4  ;;  %s1230_s9 = scalar_lea.sflag [#allocation4], %s363_s21 }
  0x25   : > { %s2291_s2 = smov (!%p367_p13, %s1361_s2), 5  ;;  %587 = vmatpush.bf16.msra.mxu1 %v1690_v6  ;;  %667 = vmatpush.bf16.msra.mxu2 %v1706_v8  ;;  %v1704_v17 = vld [vmem:[#allocation2 + $0xa8] sm:$0xff]  ;;  %v1695_v20 = vld [vmem:[#allocation2 + $0x60] sm:$0xff]  ;;  %v1694_v23 = vld [vmem:[#allocation2 + $0x58] sm:$0xff]  ;;  %s1241_s25 = scalar_lea.hbm %s2273_s8, %s1755_s17 }
  0x26   : > { %s1364_s4 = sshll.u32 %s2291_s2, 3  ;;  %v1687_v21 = vld [vmem:[#allocation2 + $0x20] sm:$0xff]  ;;  %v1686_v24 = vld [vmem:[#allocation2 + $0x18] sm:$0xff]  ;;  %v1693_v26 = vld [vmem:[#allocation2 + $0x50] sm:$0xff]  ;;  %s1362_s24 = sshll.u32 %s2291_s2, 2  ;;  %vm422_vm6 = vcmp.lt.s32.totalorder %v2166_v47, 7 }
  0x27   : > { %s376_s23 = scalar_lea.vmem %s2266_s1, %s1364_s4  ;;  %v1703_v22 = vld [vmem:[#allocation2 + $0xa0] sm:$0xff]  ;;  %v1702_v25 = vld [vmem:[#allocation2 + $0x98] sm:$0xff]  ;;  %v1685_v27 = vld [vmem:[#allocation2 + $0x10] sm:$0xff]  ;;  %s370_s10 = scalar_lea.vmem %s2265_s0, %s1362_s24  ;;  %vm405_vm7 = vcmp.lt.s32.totalorder %v2166_v47, 1 }
  0x28   : > { %v2152_v1 = vld [vmem:[%s376_s23] sm:$0xff]  ;;  %v2154_v2 = vld [vmem:[%s376_s23 + $0x8] sm:$0xff]  ;;  %526 = vmatpush.bf16.msra.mxu0 %v1697_v7  ;;  %v1701_v28 = vld [vmem:[#allocation2 + $0x90] sm:$0xff]  ;;  %s1360_s4 = sshll.u32 %s363_s21, 4  ;;  %s1953_s22 = scalar_lea.hbm %s2273_s8, 48 }
  0x29   : > { %v385_v4 = vand.u32 2, %v2152_v1  ;;  %v381_v5 = vand.u32 1, %v2152_v1  ;;  %v386_v9 = vand.u32 2, %v2154_v2  ;;  %v382_v10 = vand.u32 1, %v2154_v2  ;;  %588 = vmatpush.bf16.msra.mxu1 %v1689_v11  ;;  %668 = vmatpush.bf16.msra.mxu2 %v1705_v14  ;;  %v1692_v29 = vld [vmem:[#allocation2 + $0x48] sm:$0xff]  ;;  %v1691_v30 = vld [vmem:[#allocation2 + $0x40] sm:$0xff] }
  0x2a   : > { %v1684_v31 = vld [vmem:[#allocation2 + $0x8] sm:$0xff]  ;;  %v1682_v33 = vld [vmem:[%s370_s10] sm:$0xff]  ;;  %v389_v36 = vand.u32 4, %v2152_v1  ;;  %v390_v37 = vand.u32 4, %v2154_v2  ;;  %v1722_v38 = vld [vmem:[#allocation5 + $0x78] sm:$0xff]  ;;  %s365_s20 = scalar_lea.vmem [#allocation8], %s1360_s4 }
  0x2b   : > { %vm387_vm0 = vcmp.ne.s32.totalorder %v385_v4, 0  ;;  %vm383_vm1 = vcmp.ne.s32.totalorder %v381_v5, 0  ;;  %vm388_vm2 = vcmp.ne.s32.totalorder %v386_v9, 0  ;;  %vm384_vm3 = vcmp.ne.s32.totalorder %v382_v10, 0  ;;  %v1700_v32 = vld [vmem:[#allocation2 + $0x88] sm:$0xff]  ;;  %v1683_v34 = vld [vmem:[#allocation2] sm:$0xff]  ;;  %798 = vmatpush.bf16.msra.mxu3 %v1722_v38 }
  0x2c   : > { %v425_v12 = vsel %vm387_vm0, 1, %v2010_v0  ;;  %v408_v13 = vsel %vm383_vm1, 1, %v2010_v0  ;;  %v426_v18 = vsel %vm388_vm2, 1, %v2010_v0  ;;  %v409_v19 = vsel %vm384_vm3, 1, %v2010_v0  ;;  %527 = vmatpush.bf16.msra.mxu0 %v1696_v15  ;;  %v1699_v35 = vld [vmem:[#allocation2 + $0x80] sm:$0xff]  ;;  %v1714_v0 = vld [vmem:[#allocation5 + $0x38] sm:$0xff] }
  0x2d   : > { %428 = vperm.xlu0 %1832, %v425_v12   ;;  %411 = vperm.xlu1 %1833, %v408_v13   ;;  %vm391_vm4 = vcmp.ne.s32.totalorder %v389_v36, 0  ;;  %vm392_vm5 = vcmp.ne.s32.totalorder %v390_v37, 0  ;;  %v397_v43 = vld [vmem:[%s370_s10] sm:$0xff]   ;;  %v1730_v1 = vld [vmem:[#allocation5 + $0xb8] sm:$0xff]  ;;  %v1721_v2 = vld [vmem:[#allocation5 + $0x70] sm:$0xff]  ;;  %s1242_s26 = sshll.u32 %s365_s20, 4  ;;  %s1243_s26 = int_to_ptr.vmem [resolvable:$true] %s1242_s26 }
  0x2e   : > { %589 = vmatpush.bf16.msra.mxu1 %v1688_v16  ;;  %669 = vmatpush.bf16.msra.mxu2 %v1704_v17  ;;  %v1365_v40 = vsel %vm391_vm4, 1.0, %v2011_v39  ;;  %v1366_v41 = vsel %vm392_vm5, 1.0, %v2011_v39  ;;  %v399_v45 = vunpack.c.l.bf16 %v397_v43  ;;  %v400_v46 = vunpack.c.h.bf16 %v397_v43  ;;  %v1713_v3 = vld [vmem:[#allocation5 + $0x30] sm:$0xff]  ;;  %v1720_v5 = vld [vmem:[#allocation5 + $0x68] sm:$0xff]  ;;  %v1719_v8 = vld [vmem:[#allocation5 + $0x60] sm:$0xff]  ;;  %s1244_s10 = sshll.u32 %s1241_s25, 4  ;;  %s1245_s10 = int_to_ptr.hbm [resolvable:$true] %s1244_s10 }
  0x2f   : > { %v1835_v42 = vpack.i.bf16 %v1366_v41, %v1365_v40  ;;  %799 = vmatpush.bf16.msra.mxu3 %v1721_v2  ;;  %v1729_v4 = vld [vmem:[#allocation5 + $0xb0] sm:$0xff]  ;;  %v1712_v6 = vld [vmem:[#allocation5 + $0x28] sm:$0xff]  ;;  %v1711_v9 = vld [vmem:[#allocation5 + $0x20] sm:$0xff]  ;;  %s1947_s12 = sshra.s32 %s1245_s10, 4  ;;  %s1948_s12 = int_to_ptr.hbm [resolvable:$true] %s1947_s12 }
  0x30   : > { %528 = vmatpush.bf16.msra.mxu0 %v1695_v20  ;;  %v420_v50 = vrot.slane %v399_v45, 1  ;;  %v421_v51 = vrot.slane %v400_v46, 1  ;;  %v401_v52 = vrot.slane %v399_v45, 7  ;;  %v402_v53 = vrot.slane %v400_v46, 7  ;;  %v1728_v7 = vld [vmem:[#allocation5 + $0xa8] sm:$0xff]  ;;  %v1727_v10 = vld [vmem:[#allocation5 + $0xa0] sm:$0xff]  ;;  %p1954_p3 = scmp.lt.s32.totalorder %s1948_s12, %s2273_s8 }
  0x31   : > { %1836 = vperm.xlu2 %1834, %v1835_v42   ;;  %v1718_v11 = vld [vmem:[#allocation5 + $0x58] sm:$0xff]  ;;  %v1717_v14 = vld [vmem:[#allocation5 + $0x50] sm:$0xff]  ;;  %v1716_v17 = vld [vmem:[#allocation5 + $0x48] sm:$0xff]  ;;  %s1949_s13 = scalar_lea.hbm %s1948_s12, 16 }
  0x32   : > { %590 = vmatpush.bf16.msra.mxu1 %v1687_v21  ;;  %670 = vmatpush.bf16.msra.mxu2 %v1703_v22  ;;  %v423_v54 = vsel %vm422_vm6, %v420_v50, %v421_v51  ;;  %v424_v55 = vsel %vm422_vm6, %v421_v51, %v420_v50  ;;  %v406_v56 = vsel %vm405_vm7, %v401_v52, %v402_v53  ;;  %v1710_v12 = vld [vmem:[#allocation5 + $0x18] sm:$0xff]  ;;  %v1709_v15 = vld [vmem:[#allocation5 + $0x10] sm:$0xff]  ;;  %v1715_v20 = vld [vmem:[#allocation5 + $0x40] sm:$0xff]  ;;  %p1950_p0 = scmp.ne.s32.totalorder %s1948_s12, %s1949_s13  ;;  %p1955_p4 = scmp.lt.s32.totalorder %s1953_s22, %s1949_s13 }
  0x33   : > { %v407_v57 = vsel %vm405_vm7, %v402_v53, %v401_v52  ;;  %v1471_v58 = vpack.c.bf16 %v424_v55, %v423_v54  ;;  %800 = vmatpush.bf16.msra.mxu3 %v1720_v5  ;;  %v1726_v13 = vld [vmem:[#allocation5 + $0x98] sm:$0xff]  ;;  %v1725_v16 = vld [vmem:[#allocation5 + $0x90] sm:$0xff]  ;;  %v1707_v21 = vld [vmem:[#allocation5] sm:$0xff] }
  0x34   : > { %529 = vmatpush.bf16.msra.mxu0 %v1694_v23  ;;  %v1436_v61 = vpack.c.bf16 %v406_v56, %v407_v57  ;;  %v1723_v22 = vld [vmem:[#allocation5 + $0x80] sm:$0xff]  ;;  %v1746_v23 = vld [vmem:[#allocation7 + $0x78] sm:$0xff]  ;;  %p1951_p1 = pnand %p1950_p0, %p2097_p5  ;;  %p1956_p7 = por %p1955_p4, %p1954_p3 }
  0x35   : > { %431 = vperm.xlu0 %1832, %v426_v18   ;;  %414 = vperm.xlu1 %1833, %v409_v19   ;;  %v1708_v18 = vld [vmem:[#allocation5 + $0x8] sm:$0xff]  ;;  %v1743_v2 = vld [vmem:[#allocation7 + $0x60] sm:$0xff]  ;;  %v1742_v5 = vld [vmem:[#allocation7 + $0x58] sm:$0xff] }
  0x36   : > { %591 = vmatpush.bf16.msra.mxu1 %v1686_v24  ;;  %671 = vmatpush.bf16.msra.mxu2 %v1702_v25  ;;  %v1724_v19 = vld [vmem:[#allocation5 + $0x88] sm:$0xff]  ;;  %v1738_v24 = vld [vmem:[#allocation7 + $0x38] sm:$0xff]  ;;  %p1952_p2 = pneg %p1951_p1 }
  0x37   : > { %801 = vmatpush.bf16.msra.mxu3 %v1719_v8  ;;  %v1754_v25 = vld [vmem:[#allocation7 + $0xb8] sm:$0xff]  ;;  %v1741_v8 = vld [vmem:[#allocation7 + $0x50] sm:$0xff] }
  0x38   : > { %530 = vmatpush.bf16.msra.mxu0 %v1693_v26  ;;  %v1745_v26 = vld [vmem:[#allocation7 + $0x70] sm:$0xff]  ;;  %p1957_p8 = pnand %p1956_p7, %p1952_p2 }
  0x3a   : > { %592 = vmatpush.bf16.msra.mxu1 %v1685_v27  ;;  %672 = vmatpush.bf16.msra.mxu2 %v1701_v28 }
  0x3b   : > { %802 = vmatpush.bf16.msra.mxu3 %v1718_v11  ;;  %v1740_v11 = vld [vmem:[#allocation7 + $0x48] sm:$0xff] }
  0x3c   : > { %531 = vmatpush.bf16.msra.mxu0 %v1692_v29 }
  0x3e   : > { %593 = vmatpush.bf16.msra.mxu1 %v1684_v31  ;;  %673 = vmatpush.bf16.msra.mxu2 %v1700_v32  ;;  %v1840_v31 = vld [vmem:[%s2268_s3] ss:$0 sm:$0xff] }
  0x3f   : > { %803 = vmatpush.bf16.msra.mxu3 %v1717_v14  ;;  %v1739_v14 = vld [vmem:[#allocation7 + $0x40] sm:$0xff] }
  0x40   : > { %532 = vmatpush.bf16.msra.mxu0 %v1691_v30 }
  0x42   : > { %594 = vmatpush.bf16.msra.mxu1 %v1683_v34  ;;  %674 = vmatpush.bf16.msra.mxu2 %v1699_v35 }
  0x43   : > { %533 = vmatmul.bf16.vlgmr.msra.gmra.mxu0 %v1682_v33  ;;  %804 = vmatpush.bf16.msra.mxu3 %v1716_v17 }
  0x44   : > { %860 = vmatpush.bf16.msrb.mxu0 %v1714_v0  ;;  %v1736_v0 = vld [vmem:[#allocation7 + $0x28] sm:$0xff] }
  0x46   : > { %940 = vmatpush.bf16.msrb.mxu1 %v1730_v1  ;;  %1061 = vmatpush.bf16.msrb.mxu2 %v1746_v23  ;;  %v1752_v1 = vld [vmem:[#allocation7 + $0xa8] sm:$0xff] }
  0x47   : > { %805 = vmatpush.bf16.msra.mxu3 %v1715_v20 }
  0x48   : > { %861 = vmatpush.bf16.msrb.mxu0 %v1713_v3  ;;  %v1735_v3 = vld [vmem:[#allocation7 + $0x20] sm:$0xff] }
  0x4a   : > { %941 = vmatpush.bf16.msrb.mxu1 %v1729_v4  ;;  %1062 = vmatpush.bf16.msrb.mxu2 %v1745_v26  ;;  %v1751_v4 = vld [vmem:[#allocation7 + $0xa0] sm:$0xff] }
  0x4b   : > { %1123 = vmatpush.bf16.msrb.mxu3 %v1738_v24 }
  0x4c   : > { %862 = vmatpush.bf16.msrb.mxu0 %v1712_v6  ;;  %v1734_v6 = vld [vmem:[#allocation7 + $0x18] sm:$0xff] }
  0x4e   : > { %942 = vmatpush.bf16.msrb.mxu1 %v1728_v7  ;;  %v1750_v7 = vld [vmem:[#allocation7 + $0x98] sm:$0xff] }
  0x50   : > { %863 = vmatpush.bf16.msrb.mxu0 %v1711_v9  ;;  %v1733_v9 = vld [vmem:[#allocation7 + $0x10] sm:$0xff] }
  0x52   : > { %943 = vmatpush.bf16.msrb.mxu1 %v1727_v10  ;;  %v1749_v10 = vld [vmem:[#allocation7 + $0x90] sm:$0xff] }
  0x54   : > { %864 = vmatpush.bf16.msrb.mxu0 %v1710_v12  ;;  %v1732_v12 = vld [vmem:[#allocation7 + $0x8] sm:$0xff] }
  0x56   : > { %944 = vmatpush.bf16.msrb.mxu1 %v1726_v13  ;;  %v1748_v13 = vld [vmem:[#allocation7 + $0x88] sm:$0xff] }
  0x58   : > { %865 = vmatpush.bf16.msrb.mxu0 %v1709_v15  ;;  %v1731_v15 = vld [vmem:[#allocation7] sm:$0xff] }
  0x5a   : > { %945 = vmatpush.bf16.msrb.mxu1 %v1725_v16  ;;  %v1747_v16 = vld [vmem:[#allocation7 + $0x80] sm:$0xff] }
  0x5c   : > { %866 = vmatpush.bf16.msrb.mxu0 %v1708_v18 }
  0x5e   : > { %946 = vmatpush.bf16.msrb.mxu1 %v1724_v19 }
  0x60   : > { %867 = vmatpush.bf16.msrb.mxu0 %v1707_v21  ;;  %v1841_v21 = vld [vmem:[%s2270_s5] ss:$0 sm:$0xff] }
  0x62   : > { %947 = vmatpush.bf16.msrb.mxu1 %v1723_v22 }
  0x64   : > { %1203 = vmatpush.bf16.msra.mxu0 %v1754_v25 }
  0x8b   : > { %v1837_v33 = vpop.permute.xlu2 %1836 }
  0x8c   : > { %v2193_v35 = vunpack.i.l.bf16 %v1837_v33  ;;  %v2196_v41 = vunpack.i.h.bf16 %v1837_v33 }
  0x9f   : > { %v429_v48 = vpop.permute.xlu0 %428  ;;  %v412_v49 = vpop.permute.xlu1 %411 }
  0xa0   : > { %vm433_vm8 = vcmp.eq.s32.totalorder %v429_v48, 1  ;;  %vm416_vm11 = vcmp.eq.s32.totalorder %v412_v49, 1 }
  0xa7   : > { %v432_v59 = vpop.permute.xlu0 %431  ;;  %v415_v60 = vpop.permute.xlu1 %414 }
  0xa8   : > { %vm434_vm9 = vcmp.eq.s32.totalorder %v432_v59, 1  ;;  %vm417_vm10 = vcmp.eq.s32.totalorder %v415_v60, 1  ;;  %v1737_v59 = vld [vmem:[#allocation7 + $0x30] sm:$0xff] }
  0xa9   : > { %vm2178_vm12 = vmpackc.low %vm434_vm9, %vm433_vm8  ;;  %v1753_v60 = vld [vmem:[#allocation7 + $0xb0] sm:$0xff]  ;;  %1124 = vmatpush.bf16.msrb.mxu3 %v1737_v59 }
  0xaa   : > { %vm2182_vm13 = vmpackc.low %vm417_vm10, %vm416_vm11  ;;  %1472 = vmatmul.msk.bf16.vlgmr.msra.gmra.mxu2 %vm2178_vm12, %v1471_v58  ;;  %1204 = vmatpush.bf16.msra.mxu0 %v1753_v60 }
  0xab   : > { %1437 = vmatmul.msk.bf16.vlgmr.msra.gmra.mxu1 %vm2182_vm13, %v1436_v61  ;;  %v1744_v61 = vld [vmem:[#allocation7 + $0x68] sm:$0xff] }
  0xac   : > { %1063 = vmatpush.bf16.msrb.mxu2 %v1744_v61 }
  0xad   : > { %1125 = vmatpush.bf16.msrb.mxu3 %v1736_v0 }
  0xae   : > { %1205 = vmatpush.bf16.msra.mxu0 %v1752_v1 }
  0xb0   : > { %1064 = vmatpush.bf16.msrb.mxu2 %v1743_v2 }
  0xb1   : > { %1126 = vmatpush.bf16.msrb.mxu3 %v1735_v3 }
  0xb2   : > { %1206 = vmatpush.bf16.msra.mxu0 %v1751_v4 }
  0xb4   : > { %1065 = vmatpush.bf16.msrb.mxu2 %v1742_v5 }
  0xb5   : > { %1127 = vmatpush.bf16.msrb.mxu3 %v1734_v6 }
  0xb6   : > { %1207 = vmatpush.bf16.msra.mxu0 %v1750_v7 }
  0xb8   : > { %1066 = vmatpush.bf16.msrb.mxu2 %v1741_v8 }
  0xb9   : > { %1128 = vmatpush.bf16.msrb.mxu3 %v1733_v9 }
  0xba   : > { %1208 = vmatpush.bf16.msra.mxu0 %v1749_v10 }
  0xbc   : > { %1067 = vmatpush.bf16.msrb.mxu2 %v1740_v11 }
  0xbd   : > { %1129 = vmatpush.bf16.msrb.mxu3 %v1732_v12 }
  0xbe   : > { %1209 = vmatpush.bf16.msra.mxu0 %v1748_v13 }
  0xc0   : > { %v534_v28 = vpop.f32.mrf.mxu0  ;;  %1068 = vmatpush.bf16.msrb.mxu2 %v1739_v14 }
  0xc1   : > { %1130 = vmatpush.bf16.msrb.mxu3 %v1731_v15 }
  0xc2   : > { %1210 = vmatpush.bf16.msra.mxu0 %v1747_v16 }
  0xc8   : > { %v536_v37 = vpop.f32.mrf.mxu0 }
 0x128   : > { %v596_v27 = vpop.f32.mrf.mxu1 }
 0x129   : > { %v597_v29 = vadd.f32 %v596_v27, %v534_v28 }
 0x12d   : > { %v676_v30 = vpop.f32.mrf.mxu2 }
 0x12e   : > { %v681_v32 = vadd.f32 %v676_v30, %v597_v29 }
 0x130   : > { %v687_v34 = vadd.f32 %v1840_v31, %v681_v32  ;;  %v598_v36 = vpop.f32.mrf.mxu1 }
 0x131   : > { %v599_v38 = vadd.f32 %v598_v36, %v536_v37 }
 0x132   : > { %v699_v39 = vmul.f32 %v2193_v35, %v687_v34 }
 0x134   : > { %v701_v44 = vmax.f32 %v699_v39, 0.0 }
 0x135   : > { %v678_v40 = vpop.f32.mrf.mxu2 }
 0x136   : > { %v682_v42 = vadd.f32 %v678_v40, %v599_v38  ;;  %v703_v48 = vrot.slane %v701_v44, 7  ;;  %v709_v49 = vrot.slane %v701_v44, 1 }
 0x138   : > { %v688_v43 = vadd.f32 %v1840_v31, %v682_v42 }
 0x13a   : > { %v700_v45 = vmul.f32 %v2196_v41, %v688_v43 }
 0x13c   : > { %v702_v46 = vmax.f32 %v700_v45, 0.0 }
 0x13e   : > { %v704_v50 = vrot.slane %v702_v46, 7  ;;  %v710_v51 = vrot.slane %v702_v46, 1  ;;  %v732_v52 = vpack.c.bf16 %v702_v46, %v701_v44 }
 0x140   : > { %806 = vmatmul.bf16.vlgmr.msra.gmra.mxu3 %v732_v52  ;;  %v705_v53 = vsel %vm405_vm7, %v703_v48, %v704_v50  ;;  %v706_v54 = vsel %vm405_vm7, %v704_v50, %v703_v48  ;;  %v711_v55 = vsel %vm422_vm6, %v709_v49, %v710_v51  ;;  %v712_v56 = vsel %vm422_vm6, %v710_v51, %v709_v49  ;;  %v1842_v52 = vld [vmem:[%s2272_s7] ss:$0 sm:$0xff] }
 0x141   : > { %v1538_v57 = vpack.c.bf16 %v705_v53, %v706_v54  ;;  %v1573_v58 = vpack.c.bf16 %v712_v56, %v711_v55 }
 0x143   : > { %1539 = vmatmul.msk.bf16.vlgmr.msrb.gmra.mxu0 %vm2182_vm13, %v1538_v57  ;;  %1574 = vmatmul.msk.bf16.vlgmr.msrb.gmra.mxu1 %vm2178_vm12, %v1573_v58 }
 0x1c0   : > { %v869_v17 = vpop.f32.mrf.mxu0  ;;  %v949_v18 = vpop.f32.mrf.mxu1 }
 0x1c3   : > { %v807_v19 = vpop.f32.mrf.mxu3 }
 0x1c4   : > { %v870_v20 = vadd.f32 %v869_v17, %v807_v19 }
 0x1c6   : > { %v954_v22 = vadd.f32 %v949_v18, %v870_v20 }
 0x1c8   : > { %v960_v23 = vadd.f32 %v1841_v21, %v954_v22  ;;  %v871_v24 = vpop.f32.mrf.mxu0  ;;  %v951_v28 = vpop.f32.mrf.mxu1 }
 0x1ca   : > { %v962_v27 = vmul.f32 %v2193_v35, %v960_v23 }
 0x1cb   : > { %v809_v25 = vpop.f32.mrf.mxu3 }
 0x1cc   : > { %v872_v26 = vadd.f32 %v871_v24, %v809_v25  ;;  %v964_v31 = vmax.f32 %v962_v27, 0.0 }
 0x1ce   : > { %v955_v29 = vadd.f32 %v951_v28, %v872_v26  ;;  %v966_v34 = vrot.slane %v964_v31, 7  ;;  %v972_v36 = vrot.slane %v964_v31, 1 }
 0x1d0   : > { %v961_v30 = vadd.f32 %v1841_v21, %v955_v29 }
 0x1d2   : > { %v963_v32 = vmul.f32 %v2196_v41, %v961_v30 }
 0x1d4   : > { %v965_v33 = vmax.f32 %v963_v32, 0.0 }
 0x1d6   : > { %v967_v37 = vrot.slane %v965_v33, 7  ;;  %v973_v38 = vrot.slane %v965_v33, 1  ;;  %v995_v39 = vpack.c.bf16 %v965_v33, %v964_v31 }
 0x1d8   : > { %1069 = vmatmul.bf16.vlgmr.msrb.gmra.mxu2 %v995_v39  ;;  %v968_v40 = vsel %vm405_vm7, %v966_v34, %v967_v37  ;;  %v969_v42 = vsel %vm405_vm7, %v967_v37, %v966_v34  ;;  %v974_v43 = vsel %vm422_vm6, %v972_v36, %v973_v38  ;;  %v975_v44 = vsel %vm422_vm6, %v973_v38, %v972_v36 }
 0x1d9   : > { %v1640_v45 = vpack.c.bf16 %v968_v40, %v969_v42  ;;  %v1675_v46 = vpack.c.bf16 %v975_v44, %v974_v43 }
 0x1db   : > { %1641 = vmatmul.msk.bf16.vlgmr.msrb.gmra.mxu3 %vm2182_vm13, %v1640_v45  ;;  %1676 = vmatmul.msk.bf16.vlgmr.msra.gmra.mxu0 %vm2178_vm12, %v1675_v46 }
 0x258   : > { %v1212_v49 = vpop.f32.mrf.mxu0 }
 0x25b   : > { %v1070_v48 = vpop.f32.mrf.mxu2 }
 0x25e   : > { %v1132_v50 = vpop.f32.mrf.mxu3 }
 0x25f   : > { %v1133_v51 = vadd.f32 %v1132_v50, %v1070_v48 }
 0x260   : > { %v1214_v56 = vpop.f32.mrf.mxu0 }
 0x261   : > { %v1217_v47 = vadd.f32 %v1212_v49, %v1133_v51 }
 0x263   : > { %v1223_v53 = vadd.f32 %v1842_v52, %v1217_v47  ;;  %v1072_v63 = vpop.f32.mrf.mxu2 }
 0x265   : > { %v1225_v54 = vmul.f32 %v2193_v35, %v1223_v53 }
 0x266   : > { %v1134_v55 = vpop.f32.mrf.mxu3 }
 0x267   : > { %1227 = vst [vmem:[%s365_s20] sm:$0xff] %v1225_v54  ;;  %v1135_v62 = vadd.f32 %v1134_v55, %v1072_v63 }
 0x269   : > { %v1218_v57 = vadd.f32 %v1214_v56, %v1135_v62 }
 0x26b   : > { %v1224_v58 = vadd.f32 %v1842_v52, %v1218_v57 }
 0x26d   : > { %v1226_v59 = vmul.f32 %v2196_v41, %v1224_v58 }
 0x26f   : > { %1228 = vst [vmem:[%s365_s20 + $0x8] sm:$0xff] %v1226_v59 }
 0x270   : > { %1960 = shalt.err (!%p1957_p8)
}
 0x271   : > { %s2012_s21 = smov 128   ;;  %s2013_s17 = smov 8  }
 0x272   : > { %1768 = dma.vmem_to_hbm [thread:$0]  (%p2097_p5), %s1243_s26, 256, %s1245_s10, %s1230_s9, %s2012_s21, %s2012_s21, %s2013_s17  }
 0x273 PF: > { %p1790_p9 = scmp.ge.s32.totalorder %s2003_s30, 2  ;;  %s1259_s20 = sand.u32 1, %s1991_s27  }
 0x274   : > { %s1260_s23 = scalar_lea.sflag [#allocation4], %s1259_s20 }
 0x275   : > { %p1781_p10 = pnand %p1790_p9, %p2101_p6 }
 0x277   : > { %p1782_p11 = pneg %p1781_p10 }
 0x279   : > { %1986 = dma.done.wait (%p1782_p11), %s1260_s23, 256  }
 0x27a   : > { %1988 = vsyncadd (%p1782_p11), %s1260_s23, 4294967040  ;;  %p20_p12 = scmp.ge.s32.totalorder %s2084_s11, 5   ;;  %s2286_s27 = smov %s1995_s28 }
 0x27b   : > { %s2287_s28 = smov %s1999_s29  ;;  %s2288_s29 = smov %s2095_s14 }
 0x27c   : > { %s2289_s30 = smov %s2084_s11  ;;  %22 = sbr.rel (!%p20_p12) target bundleno = 8 (0x8), region = 109 }
 0x281   :  { %1266 = vsyncpa [#allocation3], 1 }
 0x282   :  { %1268 = vsyncpa [#allocation3 + $0x1], 1 }
 0x283   :  { %1269 = vsyncpa [#allocation6], 1 }
 0x284   :  { %1270 = vsyncpa [#allocation4], 1 }
 0x285   :  { %1272 = vsyncpa [#allocation4 + $0x1], 1 }

</bundles_post_ra>
